<compile_context>
chip_gen: v5e
topology: v5e:2x2
jax: 0.10.0
libtpu: 0.0.40
codegen_flags: <defaults>
</compile_context>

<pallas_src>
import jax
import jax.numpy as jnp
from jax.experimental import pallas as pl
from jax.experimental.pallas import tpu as pltpu

F32 = jnp.float32
BF16 = jnp.bfloat16


def _round_up(x, m):
    return (x + m - 1) // m * m


def _default_max_tile_n():
    """Bigger row tiles on 128-MiB-VMEM generations (v5e/v6e), 512 on v7x."""
    try:
        info = pltpu.get_tpu_info()
        if info.vmem_capacity_bytes >= 96 * 1024 * 1024:
            return 1024
    except Exception:
        pass
    return 512


def _pick_tile_n(N, max_tile):
    """Multiple of 8, >=2 row tiles when possible, bounded row-padding waste."""
    if N <= 8:
        return 8
    k = max(2, -(-N // max_tile))          # number of row tiles (>= 2 for megacore)
    t = _round_up(-(-N // k), 8)
    return min(t, max_tile)


def _pick_tile_l(L_pad):
    for cand in (512, 256, 128):
        if L_pad % cand == 0:
            return min(cand, L_pad)
    return 128


# ---------------------------------------------------------------------------
# One-time parameter preparation (hoisted out of the per-step path):
#   pad the data-branch weights to a lane-dense hidden dim and cast to bf16.
# Padding is inert: padded hidden columns have zero weights/bias (ReLU(0)=0)
# and the matching rows of l_scaled are zero.
# ---------------------------------------------------------------------------
def prepare_gile_params(params):
    Din, H = params["wd"].shape
    H_pad = _round_up(H, 128)
    wd = jnp.zeros((Din, H_pad), BF16).at[:, :H].set(params["wd"].astype(BF16))
    bd = jnp.zeros((1, H_pad), F32).at[:, :H].set(params["bd"])
    return {
        "wd_pad": wd,                      # (Din, H_pad) bf16
        "bd_pad": bd,                      # (1, H_pad)  f32
        "H": H, "H_pad": H_pad,
        "wl": params["wl"], "bl": params["bl"],
        "wo": params["wo"], "bo": params["bo"],
    }


# ---------------------------------------------------------------------------
# Fused row-tiled kernel, grid = (row tiles 'parallel', label tiles 'arbitrary')
#   j == 0 :  d = ReLU(data_tile @ wd + bd)    -> bf16 VMEM scratch
#   all j  :  out_tile = d @ l_scaled[:, j]^... + bo   (plain A @ B, f32 acc)
# ---------------------------------------------------------------------------
def gile_row_kernel(data_ref, wd_ref, bd_ref, lsc_ref, bo_ref, out_ref, d_scratch):
    @pl.when(pl.program_id(1) == 0)
    def _():
        d = jnp.dot(data_ref[...].astype(BF16), wd_ref[...],
                    preferred_element_type=jnp.float32)
        d = jnp.maximum(d + bd_ref[...], 0.0)
        d_scratch[...] = d.astype(BF16)

    out = jnp.dot(d_scratch[...], lsc_ref[...],
                  preferred_element_type=jnp.float32)
    out_ref[...] = out + bo_ref[0]


def gile_head(data_feats, label_feats, prepared, *, max_tile_n=None):
    """data_feats: (B, S, Din) f32; label_feats: (L, Din) f32 -> (B, S, L) f32."""
    B, S, Din = data_feats.shape
    L = label_feats.shape[0]
    H, H_pad = prepared["H"], prepared["H_pad"]
    N = B * S

    # ---- label branch: one-shot tiny GEMM in XLA, emitted pre-transposed and
    # pre-scaled by wo so the hot kernel needs no transpose and no extra mul.
    l = jnp.maximum(label_feats @ prepared["wl"] + prepared["bl"][0], 0.0)   # (L, H)
    l_scaled = (l * prepared["wo"][0]).astype(BF16)                          # (L, H)
    L_pad = _round_up(L, 128)
    lsc_t = jnp.zeros((H_pad, L_pad), BF16).at[:H, :L].set(l_scaled.T)       # (H_pad, L_pad)

    # ---- data rows: no padded host copy; ragged last tile handled by Pallas.
    data2d = data_feats.reshape(N, Din)

    if max_tile_n is None:
        max_tile_n = _default_max_tile_n()
    tile_n = _pick_tile_n(N, max_tile_n)
    tile_l = _pick_tile_l(L_pad)
    nt = pl.cdiv(N, tile_n)
    lt = L_pad // tile_l

    # ---- VMEM budget (bytes, sizeof applied exactly once) ----
    lsc_bufs = 1 if lt == 1 else 2
    need = (2 * tile_n * Din * 4            # data tile, f32, double-buffered
            + 2 * tile_n * tile_l * 4       # out tile,  f32, double-buffered
            + Din * H_pad * 2               # wd, bf16, single-buffered
            + H_pad * 4                     # bd, f32, single-buffered
            + lsc_bufs * H_pad * tile_l * 2 # l_scaled block, bf16
            + tile_n * H_pad * 2)           # d scratch, bf16
    vmem_limit = int(min(48 * 1024 * 1024,
                         max(need + 2 * 1024 * 1024, 16 * 1024 * 1024)))

    flops = 2 * N * Din * H_pad + 2 * N * H_pad * L_pad
    bytes_accessed = (4 * N * Din + 2 * Din * H_pad + 4 * H_pad
                      + 2 * H_pad * L_pad + 4 * N * L_pad)

    lsc_mode = pl.Buffered(1) if lt == 1 else None   # resident when L fits one tile

    out = pl.pallas_call(
        gile_row_kernel,
        out_shape=jax.ShapeDtypeStruct((N, L_pad), F32),
        grid_spec=pltpu.PrefetchScalarGridSpec(
            num_scalar_prefetch=0,
            grid=(nt, lt),
            in_specs=[
                pl.BlockSpec((tile_n, Din), lambda i, j: (i, 0)),          # data tile
                pl.BlockSpec((Din, H_pad), lambda i, j: (0, 0),
                             pipeline_mode=pl.Buffered(1)),                # wd (resident)
                pl.BlockSpec((1, H_pad), lambda i, j: (0, 0),
                             pipeline_mode=pl.Buffered(1)),                # bd (resident)
                pl.BlockSpec((H_pad, tile_l), lambda i, j: (0, j),
                             pipeline_mode=lsc_mode),                      # l_scaled panel
                pl.BlockSpec(memory_space=pltpu.MemorySpace.SMEM),         # bo scalar
            ],
            out_specs=pl.BlockSpec((tile_n, tile_l), lambda i, j: (i, j)),
            scratch_shapes=[pltpu.VMEM((tile_n, H_pad), BF16)],            # d scratch
        ),
        compiler_params=pltpu.CompilerParams(
            dimension_semantics=("parallel", "arbitrary"),
            vmem_limit_bytes=vmem_limit,
        ),
        cost_estimate=pl.CostEstimate(
            flops=flops, transcendentals=0, bytes_accessed=bytes_accessed),
    )(data2d, prepared["wd_pad"], prepared["bd_pad"], lsc_t,
      prepared["bo"].reshape(1))

    return out[:, :L].reshape(B, S, L)


def init_params(key, input_size, hidden_size):
    k = jax.random.split(key, 6)
    scale_in = 1.0 / jnp.sqrt(input_size)
    scale_h = 1.0 / jnp.sqrt(hidden_size)
    return {
        # stored pre-transposed: (Din, H)
        "wd": jax.random.uniform(k[0], (input_size, hidden_size), F32,
                                 -scale_in, scale_in),
        "bd": jax.random.uniform(k[1], (1, hidden_size), F32, -scale_in, scale_in),
        "wl": jax.random.uniform(k[2], (input_size, hidden_size), F32,
                                 -scale_in, scale_in),
        "bl": jax.random.uniform(k[3], (1, hidden_size), F32, -scale_in, scale_in),
        # dense: Linear(H, 1) -> weight (1, H), bias scalar kept as (1, 1)
        "wo": jax.random.uniform(k[4], (1, hidden_size), F32, -scale_h, scale_h),
        "bo": jax.random.uniform(k[5], (1, 1), F32, -scale_h, scale_h),
    }


def gile_head_reference(data_feats, label_feats, params):
    d = jnp.maximum(data_feats @ params["wd"] + params["bd"][0], 0.0)   # (B,S,H)
    l = jnp.maximum(label_feats @ params["wl"] + params["bl"][0], 0.0)  # (L,H)
    feats = d[..., :, None] * l.T[None, None, :, :]                     # (B,S,H,L)
    logits = jnp.einsum("bshl,h->bsl", feats, params["wo"][0]) + params["bo"][0, 0]
    return logits


if __name__ == "__main__":
    B, S, D_IN, HID, L = 2, 8, 32, 64, 10

    key = jax.random.PRNGKey(0)
    kd, kl, kp = jax.random.split(key, 3)
    data_feats = jax.random.normal(kd, (B, S, D_IN), F32)
    label_feats = jax.random.normal(kl, (L, D_IN), F32)
    params = init_params(kp, D_IN, HID)

    prepared = prepare_gile_params(params)      # weight pad + bf16 cast, once
    logits = gile_head(data_feats, label_feats, prepared)
    jax.block_until_ready(logits)

    ref = gile_head_reference(data_feats, label_feats, params)
    assert logits.shape == (B, S, L)
    # bf16 MXU operands with f32 accumulation -> relaxed tolerance vs f32 ref.
    assert jnp.allclose(logits, ref, atol=1e-2, rtol=1e-2), "mismatch vs reference"

    print("KERNEL_OK")
</pallas_src>

<mosaic_0001>
module attributes {stable_mosaic.version = 11 : i64} {
  func.func @gile_row_kernel(%arg0: i32, %arg1: i32, %arg2: memref<8x32xf32, #tpu.memory_space<vmem>>, %arg3: memref<32x128xbf16, #tpu.memory_space<vmem>>, %arg4: memref<1x128xf32, #tpu.memory_space<vmem>>, %arg5: memref<128x128xbf16, #tpu.memory_space<vmem>>, %arg6: memref<1xf32, #tpu.memory_space<smem>>, %arg7: memref<8x128xf32, #tpu.memory_space<vmem>>, %arg8: memref<8x128xbf16, #tpu.memory_space<vmem>>) attributes {dimension_semantics = [#tpu.dimension_semantics<parallel>, #tpu.dimension_semantics<arbitrary>], iteration_bounds = array<i64: 2, 1>, scalar_prefetch = 0 : i64, scratch_operands = 1 : i64, tpu.core_type = #tpu.core_type<tc>, window_params = [{transform_indices = @transform_0, window_bounds = array<i64: 8, 32>}, {pipeline_mode = #tpu.pipeline_mode<synchronous>, transform_indices = @transform_1, window_bounds = array<i64: 32, 128>}, {pipeline_mode = #tpu.pipeline_mode<synchronous>, transform_indices = @transform_2, window_bounds = array<i64: 1, 128>}, {pipeline_mode = #tpu.pipeline_mode<synchronous>, transform_indices = @transform_3, window_bounds = array<i64: 128, 128>}, {transform_indices = @transform_4, window_bounds = array<i64: 1>}, {transform_indices = @transform_5, window_bounds = array<i64: 8, 128>}]} {
    %c0_i32 = arith.constant 0 : i32
    %0 = arith.cmpi eq, %arg1, %c0_i32 : i32
    %1 = arith.extui %0 : i1 to i32
    %c0_i32_0 = arith.constant 0 : i32
    %2 = arith.cmpi ne, %1, %c0_i32_0 : i32
    scf.if %2 {
      %c0_7 = arith.constant 0 : index
      %c0_8 = arith.constant 0 : index
      %10 = vector.load %arg2[%c0_7, %c0_8] : memref<8x32xf32, #tpu.memory_space<vmem>>, vector<8x32xf32>
      %11 = arith.truncf %10 : vector<8x32xf32> to vector<8x32xbf16>
      %c0_9 = arith.constant 0 : index
      %c0_10 = arith.constant 0 : index
      %12 = vector.load %arg3[%c0_9, %c0_10] : memref<32x128xbf16, #tpu.memory_space<vmem>>, vector<32x128xbf16>
      %cst_11 = arith.constant dense<0.000000e+00> : vector<8x128xf32>
      %13 = tpu.matmul %11, %12, %cst_11 {dimension_numbers = #tpu.dot_dimension_numbers<[1], [0], [0], [1], [0, 0, 1, 1], [], []>} : vector<8x32xbf16>, vector<32x128xbf16>, vector<8x128xf32> -> vector<8x128xf32>
      %c0_12 = arith.constant 0 : index
      %c0_13 = arith.constant 0 : index
      %14 = vector.load %arg4[%c0_12, %c0_13] : memref<1x128xf32, #tpu.memory_space<vmem>>, vector<1x128xf32>
      %15 = vector.broadcast %14 : vector<1x128xf32> to vector<8x128xf32>
      %16 = arith.addf %13, %15 : vector<8x128xf32>
      %cst_14 = arith.constant 0.000000e+00 : f32
      %17 = vector.broadcast %cst_14 : f32 to vector<8x128xf32>
      %18 = arith.maximumf %16, %17 : vector<8x128xf32>
      %19 = arith.truncf %18 : vector<8x128xf32> to vector<8x128xbf16>
      %c0_15 = arith.constant 0 : index
      %c0_16 = arith.constant 0 : index
      %20 = vector.load %arg8[%c0_15, %c0_16] : memref<8x128xbf16, #tpu.memory_space<vmem>>, vector<8x128xbf16>
      tpu.vector_store %arg8[%c0_15, %c0_16], %19 {strides = array<i32>} : memref<8x128xbf16, #tpu.memory_space<vmem>>, vector<8x128xbf16>,
    } else {
    }
    %c0 = arith.constant 0 : index
    %c0_1 = arith.constant 0 : index
    %3 = vector.load %arg8[%c0, %c0_1] : memref<8x128xbf16, #tpu.memory_space<vmem>>, vector<8x128xbf16>
    %c0_2 = arith.constant 0 : index
    %c0_3 = arith.constant 0 : index
    %4 = vector.load %arg5[%c0_2, %c0_3] : memref<128x128xbf16, #tpu.memory_space<vmem>>, vector<128x128xbf16>
    %cst = arith.constant dense<0.000000e+00> : vector<8x128xf32>
    %5 = tpu.matmul %3, %4, %cst {dimension_numbers = #tpu.dot_dimension_numbers<[1], [0], [0], [1], [0, 0, 1, 1], [], []>} : vector<8x128xbf16>, vector<128x128xbf16>, vector<8x128xf32> -> vector<8x128xf32>
    %c0_4 = arith.constant 0 : index
    %6 = memref.load %arg6[%c0_4] : memref<1xf32, #tpu.memory_space<smem>>
    %7 = vector.broadcast %6 : f32 to vector<8x128xf32>
    %8 = arith.addf %5, %7 : vector<8x128xf32>
    %c0_5 = arith.constant 0 : index
    %c0_6 = arith.constant 0 : index
    %9 = vector.load %arg7[%c0_5, %c0_6] : memref<8x128xf32, #tpu.memory_space<vmem>>, vector<8x128xf32>
    tpu.vector_store %arg7[%c0_5, %c0_6], %8 {strides = array<i32>} : memref<8x128xf32, #tpu.memory_space<vmem>>, vector<8x128xf32>,
    return
  }
  func.func @transform_0(%arg0: i32, %arg1: i32) -> (i32, i32) {
    %c0_i32 = arith.constant 0 : i32
    %c0_i32_0 = arith.constant 0 : i32
    return %arg0, %c0_i32 : i32, i32
  }
  func.func @transform_1(%arg0: i32, %arg1: i32) -> (i32, i32) {
    %c0_i32 = arith.constant 0 : i32
    %c0_i32_0 = arith.constant 0 : i32
    %c0_i32_1 = arith.constant 0 : i32
    return %c0_i32, %c0_i32_0 : i32, i32
  }
  func.func @transform_2(%arg0: i32, %arg1: i32) -> (i32, i32) {
    %c0_i32 = arith.constant 0 : i32
    %c0_i32_0 = arith.constant 0 : i32
    %c0_i32_1 = arith.constant 0 : i32
    return %c0_i32, %c0_i32_0 : i32, i32
  }
  func.func @transform_3(%arg0: i32, %arg1: i32) -> (i32, i32) {
    %c0_i32 = arith.constant 0 : i32
    %c0_i32_0 = arith.constant 0 : i32
    return %c0_i32, %arg1 : i32, i32
  }
  func.func @transform_4(%arg0: i32, %arg1: i32) -> i32 {
    %c0_i32 = arith.constant 0 : i32
    %c0_i32_0 = arith.constant 0 : i32
    return %c0_i32 : i32
  }
  func.func @transform_5(%arg0: i32, %arg1: i32) -> (i32, i32) {
    %c0_i32 = arith.constant 0 : i32
    return %arg0, %arg1 : i32, i32
  }
}

</mosaic_0001>

<bundles_post_ra>
// kernel: tpu_custom_call.1
= control target key start
LH: loop header
LB: loop body
LE: loop exit
PB: predicated region body
PF: predicated region fallthrough
CT: control target
= control target key end

     0   :  { %s1062_s0 = inlined_call_operand.hbm [shape: f32[16,32], index: 0, kind: input, shape index: {}]   ;;  %s1063_s1 = inlined_call_operand.hbm [shape: bf16[32,128], index: 1, kind: input, shape index: {}]   ;;  %s1064_s2 = inlined_call_operand.vmem [shape: f32[1,128], index: 2, kind: input, shape index: {}]   ;;  %s1065_s3 = inlined_call_operand.hbm [shape: bf16[128,128], index: 3, kind: input, shape index: {}]   ;;  %s1066_s4 = inlined_call_operand.<no memory space> [shape: f32[1], index: 4, kind: input, shape index: {}]   ;;  %s1067_s5 = inlined_call_operand.hbm [shape: f32[16,128], index: 5, kind: output, shape index: {}]  }
   0x1   :  { %10 = sst [smem:[#allocation3]] %s1066_s4 }
   0x2   :  { %11 = vsyncpa [#allocation5], 0 }
   0x3   :  { %13 = vsyncpa [#allocation5 + $0x1], 0 }
   0x4   :  { %14 = vsyncpa [#allocation8], 0 }
   0x5   :  { %15 = vsyncpa [#allocation6], 0 }
   0x6   :  { %17 = vsyncpa [#allocation6 + $0x1], 0  ;;  %s911_s20 = smov 0   ;;  %s913_s21 = smov 0  }
   0x7   :  { %s915_s22 = smov 0   ;;  %s917_s23 = smov 0  }
   0x8   :  { %s919_s24 = smov 0   ;;  %s921_s25 = smov 0  }
   0x9 LB: > { %s542_s4 = sadd.s32 4294967295, %s872_s25   ;;  %p544_p0 = scmp.ge.s32.totalorder %s872_s25, 1  ;;  %s872_s25 = sphi %s921_s25, %s23_s25   ;;  %s868_s24 = sphi %s919_s24, %s1077_s24   ;;  %s864_s23 = sphi %s917_s23, %s1076_s23   ;;  %s860_s22 = sphi %s915_s22, %s1075_s22   ;;  %s856_s21 = sphi %s913_s21, %s1074_s21   ;;  %s852_s20 = sphi %s911_s20, %s1073_s20  }
   0xa   : > { %p945_p1 = scmp.eq.s32.totalorder %s542_s4, 0  ;;  %p183_p2 = scmp.lt.s32.totalorder %s872_s25, 3 }
   0xb   : > { %s194_s29 = sshll.u32 %s1063_s1, 4  ;;  %s874_s6 = smov [#allocation7]   ;;  %s195_s29 = int_to_ptr.hbm [resolvable:$true] %s194_s29 }
   0xc   : > { %p953_p3 = pnand %p544_p0, %p183_p2  ;;  %s196_s7 = sshll.u32 %s874_s6, 4  ;;  %s197_s7 = int_to_ptr.vmem [resolvable:$true] %s196_s7 }
   0xd   : > { %p547_p6 = scmp.ge.s32.totalorder %s872_s25, 2  ;;  %s213_s10 = sshll.u32 %s1065_s3, 4  ;;  %s214_s10 = int_to_ptr.hbm [resolvable:$true] %s213_s10 }
   0xe   : > { %p622_p4 = pneg %p953_p3  ;;  %s875_s11 = smov 64  }
   0xf   : > { %s876_s12 = smov 4   ;;  %s877_s13 = smov [#allocation9]  }
  0x10   : > { %p623_p5 = pnand %p622_p4, %p945_p1  ;;  %s215_s14 = sshll.u32 %s877_s13, 4  ;;  %s216_s14 = int_to_ptr.vmem [resolvable:$true] %s215_s14 }
  0x11   : > { %s35_s15 = sadd.s32 1, %s868_s24  ;;  %s543_s16 = sadd.s32 4294967294, %s872_s25  }
  0x12   : > { %625 = dma.hbm_to_vmem [thread:$0]  (!%p623_p5), %s195_s29, 256, %s197_s7, [#allocation8], %s875_s11, %s875_s11, %s876_s12  }
  0x13   : > { %628 = dma.hbm_to_vmem [thread:$0]  (!%p623_p5), %s214_s10, 1024, %s216_s14, [#allocation8], %s875_s11, %s875_s11, %s876_s12  }
  0x14   : > { %p37_p7 = scmp.ge.s32.totalorder %s35_s15, 2  ;;  %s42_s17 = sadd.s32 1, %s860_s22 }
  0x15   : > { %p49_p8 = scmp.ne.s32.totalorder %s860_s22, %s856_s21  ;;  %p50_p9 = scmp.eq.s32.totalorder %s872_s25, 0 }
  0x16   : > { %s1079_s15 = smov (%p37_p7, %s35_s15), 0  ;;  %p55_p10 = scmp.ne.s32.totalorder %s856_s21, %s852_s20 }
  0x17   : > { %s39_s18 = ssub.s32 %s868_s24, %s1079_s15  ;;  %p170_p11 = scmp.eq.s32.totalorder %s542_s4, 1 }
  0x18   : > { %p40_p12 = scmp.eq.s32.totalorder %s39_s18, 0  ;;  %p981_p13 = por %p945_p1, %p55_p10 }
  0x19   : > { %p985_p0 = por %p170_p11, %p49_p8  ;;  %p176_p2 = scmp.eq.s32.totalorder %s543_s16, 1 }
  0x1a   : > { %s990_s28 = scalar_select %p40_p12, %s860_s22, %s42_s17  }
  0x1b   : > { %p51_p4 = por %p50_p9, %p49_p8  ;;  %p992_p5 = por %p176_p2, %p55_p10 }
  0x1c   : > { %s232_s6 = sand.u32 1, %s860_s22   ;;  %s549_s4 = sshll.u32 %s868_s24, 3 }
  0x1d   : > { %p639_p7 = scmp.lt.s32.totalorder %s872_s25, 2  ;;  %s548_s7 = sshll.u32 %s232_s6, 3 }
  0x1e   : > { %s240_s10 = scalar_lea.hbm %s1062_s0, %s549_s4  ;;  %s236_s12 = scalar_lea.vmem [#allocation4], %s548_s7 }
  0x1f   : > { %s242_s11 = sshll.u32 %s240_s10, 4  ;;  %s244_s13 = sshll.u32 %s236_s12, 4  ;;  %s243_s11 = int_to_ptr.hbm [resolvable:$true] %s242_s11  ;;  %s245_s13 = int_to_ptr.vmem [resolvable:$true] %s244_s13 }
  0x20   : > { %p630_p11 = pnand %p639_p7, %p51_p4  ;;  %s233_s14 = scalar_lea.sflag [#allocation5], %s232_s6 }
  0x21   : > { %253 = sbr.rel (%p953_p3) target bundleno = 323 (0x143), region = 40  ;;  %s1005_s16 = sand.u32 (!%p953_p3), 1, %s856_s21  }
  0x22   : > { %632 = dma.hbm_to_vmem [thread:$0]  (!%p630_p11), %s243_s11, 128, %s245_s13, %s233_s14  }
  0x23   : > { %s551_s17 = sshll.u32 (!%p953_p3), %s1005_s16, 3  ;;  %s256_s18 = scalar_lea.sflag (!%p953_p3), [#allocation5], %s1005_s16 }
  0x24   : > { %s259_s4 = scalar_lea.vmem (!%p953_p3), [#allocation4], %s551_s17 }
  0x26   : > { %839 = dma.done.wait (%p981_p13), %s256_s18, 128  }
  0x27   : > { %841 = vsyncadd (%p981_p13), %s256_s18, 4294967168 }
  0x28   : > { %843 = dma.done.wait (%p945_p1), [#allocation8], 1280  }
  0x29   : > { %845 = vsyncadd (%p945_p1), [#allocation8], 4294966016  ;;  %v601_v0 = vld [vmem:[#allocation7 + $0x8] sm:$0xff]  ;;  %v600_v2 = vld [vmem:[#allocation7] sm:$0xff]  ;;  %vm324_vm0 = vcmask 261120   ;;  %s361_s19 = sld [smem:[#allocation3]] }
  0x2a   : > { %v609_v1 = vld [vmem:[#allocation9 + $0x38] sm:$0xff]  ;;  %334 = vmatpush.bf16.msra.mxu0 %v601_v0  ;;  %v302_v3 = vld [vmem:[%s259_s4] sm:$0xff]  ;;  %v608_v4 = vld [vmem:[#allocation9 + $0x30] sm:$0xff]  ;;  %s597_s6 = sshll.u32 %s864_s23, 3  ;;  %s296_s10 = scalar_lea.vmem [#allocation10], %s551_s17 }
  0x2b   : > { %411 = vmatpush.bf16.msra.mxu1 %v609_v1  ;;  %v303_v5 = vpack.c.bf16 %v302_v3, %v302_v3  ;;  %v607_v6 = vld [vmem:[#allocation9 + $0x28] sm:$0xff]  ;;  %v606_v7 = vld [vmem:[#allocation9 + $0x20] sm:$0xff]  ;;  %v605_v8 = vld [vmem:[#allocation9 + $0x18] sm:$0xff]  ;;  %s437_s9 = scalar_lea.hbm %s1067_s5, %s597_s6  ;;  %s439_s11 = sshll.u32 %s296_s10, 4  ;;  %s440_s11 = int_to_ptr.vmem [resolvable:$true] %s439_s11 }
  0x2c   : > { %v604_v9 = vld [vmem:[#allocation9 + $0x10] sm:$0xff]  ;;  %v603_v10 = vld [vmem:[#allocation9 + $0x8] sm:$0xff]  ;;  %v602_v11 = vld [vmem:[#allocation9] sm:$0xff]  ;;  %s441_s12 = sshll.u32 %s437_s9, 4  ;;  %s426_s13 = scalar_lea.sflag [#allocation6], %s1005_s16  ;;  %s442_s12 = int_to_ptr.hbm [resolvable:$true] %s441_s12 }
  0x2d   : > { %v695_v12 = vld [vmem:[%s1064_s2] ss:$0 sm:$0xff]  ;;  %s800_s14 = sshra.s32 %s442_s12, 4  ;;  %s806_s26 = scalar_lea.hbm %s1067_s5, 16  ;;  %s801_s14 = int_to_ptr.hbm [resolvable:$true] %s800_s14 }
  0x2e   : > { %335 = vmatpush.bf16.msra.mxu0 %v600_v2  ;;  %s802_s18 = scalar_lea.hbm %s801_s14, 8  ;;  %p807_p9 = scmp.lt.s32.totalorder %s801_s14, %s1067_s5 }
  0x2f   : > { %412 = vmatpush.bf16.msra.mxu1 %v608_v4  ;;  %v362_v19 = vstv %s361_s19  ;;  %p803_p1 = scmp.ne.s32.totalorder %s801_s14, %s802_s18  ;;  %p808_p10 = scmp.lt.s32.totalorder %s806_s26, %s802_s18 }
  0x31   : > { %563 = vmatmul.msk.bf16.vlgmr.msra.gmra.mxu0 %vm324_vm0, %v303_v5  ;;  %p804_p3 = pnand %p803_p1, %p985_p0  ;;  %p809_p12 = por %p808_p10, %p807_p9 }
  0x33   : > { %413 = vmatpush.bf16.msra.mxu1 %v607_v6  ;;  %p805_p8 = pneg %p804_p3 }
  0x35   : > { %p810_p13 = pnand %p809_p12, %p805_p8 }
  0x37   : > { %414 = vmatpush.bf16.msra.mxu1 %v606_v7 }
  0x3b   : > { %415 = vmatpush.bf16.msra.mxu1 %v605_v8 }
  0x3f   : > { %416 = vmatpush.bf16.msra.mxu1 %v604_v9 }
  0x43   : > { %417 = vmatpush.bf16.msra.mxu1 %v603_v10 }
  0x47   : > { %418 = vmatpush.bf16.msra.mxu1 %v602_v11 }
  0xae   : > { %v337_v13 = vpop.f32.mrf.mxu0 }
  0xaf   : > { %v338_v14 = vadd.f32 %v695_v12, %v337_v13 }
  0xb1   : > { %v341_v15 = vmax.f32 %v338_v14, 0.0 }
  0xb3   : > { %v342_v16 = vpack.c.bf16 %v341_v15, %v341_v15 }
  0xb5   : > { %343 = vst [vmem:[#allocation2] sm:$0xf] %v342_v16 }
  0xb6   : > { %v339_v17 = vpop.f32.mrf.mxu0 }
  0xbc   : > { %v344_v18 = vld [vmem:[#allocation2] sm:$0xf] }
  0xbd   : > { %419 = vmatmul.bf16.vlgmr.msra.gmra.mxu1 %v344_v18 }
 0x13a   : > { %v420_v20 = vpop.f32.mrf.mxu1 }
 0x13b   : > { %v421_v21 = vadd.f32 %v420_v20, %v362_v19 }
 0x13d   : > { %424 = vst [vmem:[%s296_s10] sm:$0xff] %v421_v21 }
 0x13e   : > { %813 = shalt.err (!%p810_p13)
}
 0x13f   : > { %620 = dma.vmem_to_hbm [thread:$0]  (%p985_p0), %s440_s11, 128, %s442_s12, %s426_s13  }
 0x142   : > { %v422_v22 = vpop.f32.mrf.mxu1 }
 0x143 PF: > { %s453_s16 = sand.u32 1, %s852_s20   ;;  %p634_p2 = pnand %p547_p6, %p992_p5 }
 0x144   : > { %s454_s19 = scalar_lea.sflag [#allocation6], %s453_s16 }
 0x145   : > { %p635_p4 = pneg %p634_p2 }
 0x147   : > { %847 = dma.done.wait (%p635_p4), %s454_s19, 128  }
 0x148   : > { %849 = vsyncadd (%p635_p4), %s454_s19, 4294967168  ;;  %s23_s25 = sadd.s32 1, %s872_s25   ;;  %s1073_s20 = smov %s856_s21 }
 0x149   : > { %p20_p7 = scmp.ge.s32.totalorder %s23_s25, 4   ;;  %s1074_s21 = smov %s860_s22 }
 0x14a   : > { %s1075_s22 = smov %s990_s28  ;;  %s1076_s23 = smov %s868_s24 }
 0x14b   : > { %s1077_s24 = smov %s1079_s15  ;;  %22 = sbr.rel (!%p20_p7) target bundleno = 9 (0x9), region = 98 }
 0x150   :  { %460 = vsyncpa [#allocation5], 1 }
 0x151   :  { %462 = vsyncpa [#allocation5 + $0x1], 1 }
 0x152   :  { %463 = vsyncpa [#allocation8], 1 }
 0x153   :  { %464 = vsyncpa [#allocation6], 1 }
 0x154   :  { %466 = vsyncpa [#allocation6 + $0x1], 1 }

</bundles_post_ra>
